<compile_context>
chip_gen: v7x
topology: tpu7x:2x2x1
jax: 0.10.0
libtpu: 0.0.40
codegen_flags: <defaults>
</compile_context>

<pallas_src>
import jax
import jax.numpy as jnp
from jax.experimental import pallas as pl
from jax.experimental.pallas import tpu as pltpu


def ae_kernel(x_ref,
              w1_ref, b1_ref,
              w2_ref, b2_ref,
              w3_ref, b3_ref,
              w4_ref, b4_ref,
              lat_ref, rec_ref):
    bf16 = jnp.bfloat16
    x = x_ref[...].astype(bf16)

    # Encoder: conv1 = Linear(d0, d1) + ReLU ; conv2 = Linear(d1, d2)
    h1 = jnp.dot(x, w1_ref[...],
                 preferred_element_type=jnp.float32) + b1_ref[...]
    h1 = jnp.maximum(h1, 0.0)
    latent = jnp.dot(h1.astype(bf16), w2_ref[...],
                     preferred_element_type=jnp.float32) + b2_ref[...]

    # Decoder: conv3 = Linear(d2, d3) + ReLU ; conv4 = Linear(d3, d4) + Tanh
    h3 = jnp.dot(latent.astype(bf16), w3_ref[...],
                 preferred_element_type=jnp.float32) + b3_ref[...]
    h3 = jnp.maximum(h3, 0.0)
    rec = jnp.tanh(jnp.dot(h3.astype(bf16), w4_ref[...],
                           preferred_element_type=jnp.float32) + b4_ref[...])

    lat_ref[...] = latent
    rec_ref[...] = rec


def _round_up(x, m):
    return ((x + m - 1) // m) * m


def my_ae_forward(x, params, *, max_block_b=4096):
    """params: dict w1,b1,w2,b2,w3,b3,w4,b4 (weights [in,out] f32, biases [1,out] f32)."""
    B, d0 = x.shape
    d1 = params["w1"].shape[1]
    d2 = params["w2"].shape[1]
    d3 = params["w3"].shape[1]
    d4 = params["w4"].shape[1]

    # --- Grid / tile selection -------------------------------------------------
    # As few, as large as possible batch tiles (amortize per-step overhead and
    # masked narrow-lane output stores), but keep an even block count >= 2 for
    # B > 8 so v7x's two TensorCores both get work via the "parallel" axis.
    n_blocks = max(1, pl.cdiv(B, max_block_b))
    if B > 8:
        n_blocks = max(n_blocks, 2)
    if n_blocks > 1 and n_blocks % 2:
        n_blocks += 1
    tb = _round_up(pl.cdiv(B, n_blocks), 8)   # always a multiple of 8 sublanes
    b_pad = n_blocks * tb
    if b_pad != B:
        x = jnp.pad(x, ((0, b_pad - B), (0, 0)))

    # --- Operands: weights pre-cast to bf16 once; biases stay f32 ---------------
    bf16 = jnp.bfloat16
    weights = (params["w1"].astype(bf16), params["b1"],
               params["w2"].astype(bf16), params["b2"],
               params["w3"].astype(bf16), params["b3"],
               params["w4"].astype(bf16), params["b4"])

    # x / outputs tiled along batch; weights/biases use a constant block index
    # so they stay VMEM-resident across all grid steps.
    x_spec = pl.BlockSpec((tb, d0), lambda i: (i, 0))
    w_specs = [pl.BlockSpec(w.shape, lambda i: (0, 0)) for w in weights]

    out_shapes = (
        jax.ShapeDtypeStruct((b_pad, d2), jnp.float32),   # Latent_Representation
        jax.ShapeDtypeStruct((b_pad, d4), jnp.float32),   # Features_Reconstruction
    )
    out_specs = (pl.BlockSpec((tb, d2), lambda i: (i, 0)),
                 pl.BlockSpec((tb, d4), lambda i: (i, 0)))

    # --- VMEM budget + cost hint -------------------------------------------------
    weight_bytes = sum(int(w.size) * w.dtype.itemsize for w in weights)
    stream_bytes = tb * (d0 + d2 + d4) * 4 * 2            # double-buffered x/lat/rec
    interm_bytes = tb * (d1 + d2 + d3 + d4) * 4           # f32 intermediates
    vmem_budget = int(min(32 << 20,
                          max(8 << 20,
                              2 * (weight_bytes + stream_bytes + interm_bytes))))

    cost = pl.CostEstimate(
        flops=2 * b_pad * (d0 * d1 + d1 * d2 + d2 * d3 + d3 * d4),
        transcendentals=b_pad * d4,
        bytes_accessed=b_pad * (d0 + d2 + d4) * 4 + weight_bytes,
    )

    latent, rec = pl.pallas_call(
        ae_kernel,
        out_shape=out_shapes,
        grid=(n_blocks,),
        in_specs=[x_spec] + w_specs,
        out_specs=out_specs,
        compiler_params=pltpu.CompilerParams(
            dimension_semantics=("parallel",),
            vmem_limit_bytes=vmem_budget),
        cost_estimate=cost,
    )(x, *weights)

    return latent[:B], rec[:B]


def init_params(key, d_0, d_1, d_2, d_3, d_4):
    """Deterministic init mimicking torch.nn.Linear (uniform +/- 1/sqrt(fan_in))."""
    def linear(k, din, dout):
        kw, kb = jax.random.split(k)
        bound = 1.0 / jnp.sqrt(din)
        w = jax.random.uniform(kw, (din, dout), jnp.float32, -bound, bound)
        b = jax.random.uniform(kb, (1, dout), jnp.float32, -bound, bound)
        return w, b

    k1, k2, k3, k4 = jax.random.split(key, 4)
    w1, b1 = linear(k1, d_0, d_1)
    w2, b2 = linear(k2, d_1, d_2)
    w3, b3 = linear(k3, d_2, d_3)
    w4, b4 = linear(k4, d_3, d_4)
    return dict(w1=w1, b1=b1, w2=w2, b2=b2, w3=w3, b3=b3, w4=w4, b4=b4)


if __name__ == "__main__":
    # Small shapes consistent with the module; B chosen so the batch axis tiles.
    B, d_0, d_1, d_2, d_3, d_4 = 256, 32, 64, 16, 64, 32

    key = jax.random.PRNGKey(0)
    k_params, k_x = jax.random.split(key)

    params = init_params(k_params, d_0, d_1, d_2, d_3, d_4)
    x = jax.random.normal(k_x, (B, d_0), jnp.float32)

    latent, recon = my_ae_forward(x, params)
    jax.block_until_ready((latent, recon))

    # Pure-JAX reference using the same bf16-input/weight, f32-accumulate matmuls.
    # TODO(synk): bf16 matmuls deviate from the fp32 PyTorch reference at ~1e-3
    # level; switch weights/x casts to f32 if bit-level parity is required.
    bf16 = jnp.bfloat16
    h1 = jnp.maximum(
        jnp.dot(x.astype(bf16), params["w1"].astype(bf16),
                preferred_element_type=jnp.float32) + params["b1"], 0.0)
    lat_ref = jnp.dot(h1.astype(bf16), params["w2"].astype(bf16),
                      preferred_element_type=jnp.float32) + params["b2"]
    h3 = jnp.maximum(
        jnp.dot(lat_ref.astype(bf16), params["w3"].astype(bf16),
                preferred_element_type=jnp.float32) + params["b3"], 0.0)
    rec_ref = jnp.tanh(jnp.dot(h3.astype(bf16), params["w4"].astype(bf16),
                               preferred_element_type=jnp.float32) + params["b4"])

    assert latent.shape == (B, d_2) and recon.shape == (B, d_4)
    assert jnp.allclose(latent, lat_ref, atol=1e-3, rtol=1e-3), "latent mismatch"
    assert jnp.allclose(recon, rec_ref, atol=1e-3, rtol=1e-3), "reconstruction mismatch"

    print("KERNEL_OK")
</pallas_src>

<mosaic_0001>
module attributes {stable_mosaic.version = 11 : i64} {
  func.func @ae_kernel(%arg0: i32, %arg1: memref<128x32xf32, #tpu.memory_space<vmem>>, %arg2: memref<32x64xbf16, #tpu.memory_space<vmem>>, %arg3: memref<1x64xf32, #tpu.memory_space<vmem>>, %arg4: memref<64x16xbf16, #tpu.memory_space<vmem>>, %arg5: memref<1x16xf32, #tpu.memory_space<vmem>>, %arg6: memref<16x64xbf16, #tpu.memory_space<vmem>>, %arg7: memref<1x64xf32, #tpu.memory_space<vmem>>, %arg8: memref<64x32xbf16, #tpu.memory_space<vmem>>, %arg9: memref<1x32xf32, #tpu.memory_space<vmem>>, %arg10: memref<128x16xf32, #tpu.memory_space<vmem>>, %arg11: memref<128x32xf32, #tpu.memory_space<vmem>>) attributes {dimension_semantics = [#tpu.dimension_semantics<parallel>], iteration_bounds = array<i64: 2>, scalar_prefetch = 0 : i64, scratch_operands = 0 : i64, tpu.core_type = #tpu.core_type<tc>, window_params = [{transform_indices = @transform_0, window_bounds = array<i64: 128, 32>}, {pipeline_mode = #tpu.pipeline_mode<synchronous>, transform_indices = @transform_1, window_bounds = array<i64: 32, 64>}, {pipeline_mode = #tpu.pipeline_mode<synchronous>, transform_indices = @transform_2, window_bounds = array<i64: 1, 64>}, {pipeline_mode = #tpu.pipeline_mode<synchronous>, transform_indices = @transform_3, window_bounds = array<i64: 64, 16>}, {pipeline_mode = #tpu.pipeline_mode<synchronous>, transform_indices = @transform_4, window_bounds = array<i64: 1, 16>}, {pipeline_mode = #tpu.pipeline_mode<synchronous>, transform_indices = @transform_5, window_bounds = array<i64: 16, 64>}, {pipeline_mode = #tpu.pipeline_mode<synchronous>, transform_indices = @transform_6, window_bounds = array<i64: 1, 64>}, {pipeline_mode = #tpu.pipeline_mode<synchronous>, transform_indices = @transform_7, window_bounds = array<i64: 64, 32>}, {pipeline_mode = #tpu.pipeline_mode<synchronous>, transform_indices = @transform_8, window_bounds = array<i64: 1, 32>}, {transform_indices = @transform_9, window_bounds = array<i64: 128, 16>}, {transform_indices = @transform_10, window_bounds = array<i64: 128, 32>}]} {
    %c0 = arith.constant 0 : index
    %c0_0 = arith.constant 0 : index
    %0 = vector.load %arg1[%c0, %c0_0] : memref<128x32xf32, #tpu.memory_space<vmem>>, vector<128x32xf32>
    %1 = arith.truncf %0 : vector<128x32xf32> to vector<128x32xbf16>
    %c0_1 = arith.constant 0 : index
    %c0_2 = arith.constant 0 : index
    %2 = vector.load %arg2[%c0_1, %c0_2] : memref<32x64xbf16, #tpu.memory_space<vmem>>, vector<32x64xbf16>
    %cst = arith.constant dense<0.000000e+00> : vector<128x64xf32>
    %3 = tpu.matmul %1, %2, %cst {dimension_numbers = #tpu.dot_dimension_numbers<[1], [0], [0], [1], [0, 0, 1, 1], [], []>} : vector<128x32xbf16>, vector<32x64xbf16>, vector<128x64xf32> -> vector<128x64xf32>
    %c0_3 = arith.constant 0 : index
    %c0_4 = arith.constant 0 : index
    %4 = vector.load %arg3[%c0_3, %c0_4] : memref<1x64xf32, #tpu.memory_space<vmem>>, vector<1x64xf32>
    %5 = vector.broadcast %4 : vector<1x64xf32> to vector<128x64xf32>
    %6 = arith.addf %3, %5 : vector<128x64xf32>
    %cst_5 = arith.constant 0.000000e+00 : f32
    %7 = vector.broadcast %cst_5 : f32 to vector<128x64xf32>
    %8 = arith.maximumf %6, %7 : vector<128x64xf32>
    %9 = arith.truncf %8 : vector<128x64xf32> to vector<128x64xbf16>
    %c0_6 = arith.constant 0 : index
    %c0_7 = arith.constant 0 : index
    %10 = vector.load %arg4[%c0_6, %c0_7] : memref<64x16xbf16, #tpu.memory_space<vmem>>, vector<64x16xbf16>
    %cst_8 = arith.constant dense<0.000000e+00> : vector<128x16xf32>
    %11 = tpu.matmul %9, %10, %cst_8 {dimension_numbers = #tpu.dot_dimension_numbers<[1], [0], [0], [1], [0, 0, 1, 1], [], []>} : vector<128x64xbf16>, vector<64x16xbf16>, vector<128x16xf32> -> vector<128x16xf32>
    %c0_9 = arith.constant 0 : index
    %c0_10 = arith.constant 0 : index
    %12 = vector.load %arg5[%c0_9, %c0_10] : memref<1x16xf32, #tpu.memory_space<vmem>>, vector<1x16xf32>
    %13 = vector.broadcast %12 : vector<1x16xf32> to vector<128x16xf32>
    %14 = arith.addf %11, %13 : vector<128x16xf32>
    %15 = arith.truncf %14 : vector<128x16xf32> to vector<128x16xbf16>
    %c0_11 = arith.constant 0 : index
    %c0_12 = arith.constant 0 : index
    %16 = vector.load %arg6[%c0_11, %c0_12] : memref<16x64xbf16, #tpu.memory_space<vmem>>, vector<16x64xbf16>
    %cst_13 = arith.constant dense<0.000000e+00> : vector<128x64xf32>
    %17 = tpu.matmul %15, %16, %cst_13 {dimension_numbers = #tpu.dot_dimension_numbers<[1], [0], [0], [1], [0, 0, 1, 1], [], []>} : vector<128x16xbf16>, vector<16x64xbf16>, vector<128x64xf32> -> vector<128x64xf32>
    %c0_14 = arith.constant 0 : index
    %c0_15 = arith.constant 0 : index
    %18 = vector.load %arg7[%c0_14, %c0_15] : memref<1x64xf32, #tpu.memory_space<vmem>>, vector<1x64xf32>
    %19 = vector.broadcast %18 : vector<1x64xf32> to vector<128x64xf32>
    %20 = arith.addf %17, %19 : vector<128x64xf32>
    %cst_16 = arith.constant 0.000000e+00 : f32
    %21 = vector.broadcast %cst_16 : f32 to vector<128x64xf32>
    %22 = arith.maximumf %20, %21 : vector<128x64xf32>
    %23 = arith.truncf %22 : vector<128x64xf32> to vector<128x64xbf16>
    %c0_17 = arith.constant 0 : index
    %c0_18 = arith.constant 0 : index
    %24 = vector.load %arg8[%c0_17, %c0_18] : memref<64x32xbf16, #tpu.memory_space<vmem>>, vector<64x32xbf16>
    %cst_19 = arith.constant dense<0.000000e+00> : vector<128x32xf32>
    %25 = tpu.matmul %23, %24, %cst_19 {dimension_numbers = #tpu.dot_dimension_numbers<[1], [0], [0], [1], [0, 0, 1, 1], [], []>} : vector<128x64xbf16>, vector<64x32xbf16>, vector<128x32xf32> -> vector<128x32xf32>
    %c0_20 = arith.constant 0 : index
    %c0_21 = arith.constant 0 : index
    %26 = vector.load %arg9[%c0_20, %c0_21] : memref<1x32xf32, #tpu.memory_space<vmem>>, vector<1x32xf32>
    %27 = vector.broadcast %26 : vector<1x32xf32> to vector<128x32xf32>
    %28 = arith.addf %25, %27 : vector<128x32xf32>
    %29 = math.tanh %28 : vector<128x32xf32>
    %c0_22 = arith.constant 0 : index
    %c0_23 = arith.constant 0 : index
    %30 = vector.load %arg10[%c0_22, %c0_23] : memref<128x16xf32, #tpu.memory_space<vmem>>, vector<128x16xf32>
    tpu.vector_store %arg10[%c0_22, %c0_23], %14 {strides = array<i32>} : memref<128x16xf32, #tpu.memory_space<vmem>>, vector<128x16xf32>,
    %c0_24 = arith.constant 0 : index
    %c0_25 = arith.constant 0 : index
    %31 = vector.load %arg11[%c0_24, %c0_25] : memref<128x32xf32, #tpu.memory_space<vmem>>, vector<128x32xf32>
    tpu.vector_store %arg11[%c0_24, %c0_25], %29 {strides = array<i32>} : memref<128x32xf32, #tpu.memory_space<vmem>>, vector<128x32xf32>,
    return
  }
  func.func @transform_0(%arg0: i32) -> (i32, i32) {
    %c0_i32 = arith.constant 0 : i32
    %c0_i32_0 = arith.constant 0 : i32
    return %arg0, %c0_i32 : i32, i32
  }
  func.func @transform_1(%arg0: i32) -> (i32, i32) {
    %c0_i32 = arith.constant 0 : i32
    %c0_i32_0 = arith.constant 0 : i32
    %c0_i32_1 = arith.constant 0 : i32
    return %c0_i32, %c0_i32_0 : i32, i32
  }
  func.func @transform_2(%arg0: i32) -> (i32, i32) {
    %c0_i32 = arith.constant 0 : i32
    %c0_i32_0 = arith.constant 0 : i32
    %c0_i32_1 = arith.constant 0 : i32
    return %c0_i32, %c0_i32_0 : i32, i32
  }
  func.func @transform_3(%arg0: i32) -> (i32, i32) {
    %c0_i32 = arith.constant 0 : i32
    %c0_i32_0 = arith.constant 0 : i32
    %c0_i32_1 = arith.constant 0 : i32
    return %c0_i32, %c0_i32_0 : i32, i32
  }
  func.func @transform_4(%arg0: i32) -> (i32, i32) {
    %c0_i32 = arith.constant 0 : i32
    %c0_i32_0 = arith.constant 0 : i32
    %c0_i32_1 = arith.constant 0 : i32
    return %c0_i32, %c0_i32_0 : i32, i32
  }
  func.func @transform_5(%arg0: i32) -> (i32, i32) {
    %c0_i32 = arith.constant 0 : i32
    %c0_i32_0 = arith.constant 0 : i32
    %c0_i32_1 = arith.constant 0 : i32
    return %c0_i32, %c0_i32_0 : i32, i32
  }
  func.func @transform_6(%arg0: i32) -> (i32, i32) {
    %c0_i32 = arith.constant 0 : i32
    %c0_i32_0 = arith.constant 0 : i32
    %c0_i32_1 = arith.constant 0 : i32
    return %c0_i32, %c0_i32_0 : i32, i32
  }
  func.func @transform_7(%arg0: i32) -> (i32, i32) {
    %c0_i32 = arith.constant 0 : i32
    %c0_i32_0 = arith.constant 0 : i32
    %c0_i32_1 = arith.constant 0 : i32
    return %c0_i32, %c0_i32_0 : i32, i32
  }
  func.func @transform_8(%arg0: i32) -> (i32, i32) {
    %c0_i32 = arith.constant 0 : i32
    %c0_i32_0 = arith.constant 0 : i32
    %c0_i32_1 = arith.constant 0 : i32
    return %c0_i32, %c0_i32_0 : i32, i32
  }
  func.func @transform_9(%arg0: i32) -> (i32, i32) {
    %c0_i32 = arith.constant 0 : i32
    %c0_i32_0 = arith.constant 0 : i32
    return %arg0, %c0_i32 : i32, i32
  }
  func.func @transform_10(%arg0: i32) -> (i32, i32) {
    %c0_i32 = arith.constant 0 : i32
    %c0_i32_0 = arith.constant 0 : i32
    return %arg0, %c0_i32 : i32, i32
  }
}

</mosaic_0001>

<bundles_post_ra>
// kernel: tpu_custom_call.1
= control target key start
LH: loop header
LB: loop body
LE: loop exit
PB: predicated region body
PF: predicated region fallthrough
CT: control target
= control target key end

     0   :  { %s1502_s13 = smov 0   ;;  %s1708_s0 = inlined_call_operand.vmem [shape: f32[256,32], index: 0, kind: input, shape index: {}]   ;;  %s1709_s1 = inlined_call_operand.vmem [shape: bf16[32,64], index: 1, kind: input, shape index: {}]   ;;  %s1710_s2 = inlined_call_operand.vmem [shape: f32[1,64], index: 2, kind: input, shape index: {}]   ;;  %s1711_s3 = inlined_call_operand.vmem [shape: bf16[64,16], index: 3, kind: input, shape index: {}]   ;;  %s1712_s4 = inlined_call_operand.vmem [shape: f32[1,16], index: 4, kind: input, shape index: {}]   ;;  %s1713_s5 = inlined_call_operand.vmem [shape: bf16[16,64], index: 5, kind: input, shape index: {}]   ;;  %s1714_s6 = inlined_call_operand.vmem [shape: f32[1,64], index: 6, kind: input, shape index: {}]   ;;  %s1715_s7 = inlined_call_operand.vmem [shape: bf16[64,32], index: 7, kind: input, shape index: {}]   ;;  %s1716_s8 = inlined_call_operand.vmem [shape: f32[1,32], index: 8, kind: input, shape index: {}]   ;;  %s1717_s9 = inlined_call_operand.vmem [shape: f32[256,16], index: 9, kind: output, shape index: {0}]   ;;  %s1718_s10 = inlined_call_operand.vmem [shape: f32[256,32], index: 10, kind: output, shape index: {1}]  }
   0x1 LB: > { %s1199_s14 = sadd.s32 4294967295, %s1445_s13   ;;  %p1203_p0 = scmp.ge.s32.totalorder %s1445_s13, 1  ;;  %s1445_s13 = sphi %s1502_s13, %s21_s13  }
   0x2   : > { %p316_p1 = scmp.lt.s32.totalorder %s1445_s13, 3 }
   0x4   : > { %p317_p2 = pnand %p1203_p0, %p316_p1 }
   0x5   : > { %v1396_v0 = vld [vmem:[%s1709_s1] sm:$0xff] (!%p317_p2)   ;;  %s1204_s17 = sshll.u32 (!%p317_p2), %s1199_s14, 4  ;;  %v1397_v1 = vld [vmem:[%s1709_s1 + $0x8] sm:$0xff] (!%p317_p2)   ;;  %vm425_vm0 = vcmask (!%p317_p2), 261120   ;;  %v1400_v28 = vld [vmem:[%s1711_s3 + $0x10] sm:$0xff] (!%p317_p2)   ;;  %vm610_vm1 = vcmask (!%p317_p2), 523264  }
   0x6   : > { %320 = sbr.rel (%p317_p2) target bundleno = 937 (0x3a9), region = 56  ;;  %p360_p3 = scmp.lt.s32.totalorder (!%p317_p2), %s1204_s17, 31  ;;  %1302 = vmatprep.subr.bf16.mxu0 (!%p317_p2), %v1396_v0  ;;  %v1398_v2 = vld [vmem:[%s1711_s3] sm:$0xff] (!%p317_p2)   ;;  %v1399_v3 = vld [vmem:[%s1711_s3 + $0x8] sm:$0xff] (!%p317_p2)   ;;  %v1401_v29 = vld [vmem:[%s1711_s3 + $0x18] sm:$0xff] (!%p317_p2)   ;;  %vm755_vm2 = vcmask (!%p317_p2), 130048  }
   0x7   : > { %1303 = vmatpush3.bf16.msra.mxu0 (!%p317_p2), %v1396_v0  ;;  %1322 = vmatprep.subr.bf16.mxu1 (!%p317_p2), %v1398_v2  ;;  %v1402_v30 = vld [vmem:[%s1713_s5] sm:$0xff] (!%p317_p2)  }
   0x8   : > { %1304 = vmatprep.subr.bf16.mxu0 (!%p317_p2), %v1397_v1  ;;  %1323 = vmatpush3.bf16.msra.mxu1 (!%p317_p2), %v1398_v2  ;;  %v1210_v31 = vld [vmem:[%s1710_s2] ss:$0 sm:$0xff] (!%p317_p2) }
   0x9   : > { %1324 = vmatprep.subr.bf16.mxu1 (!%p317_p2), %v1399_v3 }
   0xb   : > { %1305 = vmatpush3.bf16.msra.mxu0 (!%p317_p2), %v1397_v1 }
   0xc   : > { %1325 = vmatpush3.bf16.msra.mxu1 (!%p317_p2), %v1399_v3  ;;  %1346 = vmatprep.subr.bf16.mxu0 (!%p317_p2), %v1402_v30 }
   0xd   : > { %s1720_s17 = smov (!%p360_p3, %s1204_s17), 31  ;;  %1326 = vmatprep.subr.bf16.mxu1 %v1400_v28 }
   0xe   : > { %s1522_s24 = sshll.u32 %s1720_s17, 3 }
   0xf   : > { %s1528_s27 = scalar_lea.vmem %s1708_s0, %s1522_s24  ;;  %s1590_s28 = scalar_lea.vmem %s1717_s9, %s1522_s24 }
  0x10   : > { %v378_v4 = vld [vmem:[%s1528_s27] sm:$0xff]  ;;  %v379_v5 = vld [vmem:[%s1528_s27 + $0x8] sm:$0xff]  ;;  %v380_v6 = vld [vmem:[%s1528_s27 + $0x10] sm:$0xff]  ;;  %1327 = vmatpush3.bf16.msra.mxu1 %v1400_v28  ;;  %s1661_s18 = scalar_lea.vmem %s1718_s10, %s1522_s24 }
  0x11   : > { %v394_v7 = vpack.c.bf16 %v379_v5, %v378_v4  ;;  %v381_v8 = vld [vmem:[%s1528_s27 + $0x18] sm:$0xff]  ;;  %v382_v9 = vld [vmem:[%s1528_s27 + $0x20] sm:$0xff]  ;;  %v383_v10 = vld [vmem:[%s1528_s27 + $0x28] sm:$0xff]  ;;  %1328 = vmatprep.subr.bf16.mxu1 %v1401_v29 }
  0x12   : > { %v395_v11 = vpack.c.bf16 %v381_v8, %v380_v6  ;;  %v396_v12 = vpack.c.bf16 %v383_v10, %v382_v9  ;;  %v384_v13 = vld [vmem:[%s1528_s27 + $0x30] sm:$0xff]  ;;  %v385_v14 = vld [vmem:[%s1528_s27 + $0x38] sm:$0xff]  ;;  %v386_v15 = vld [vmem:[%s1528_s27 + $0x40] sm:$0xff] }
  0x13   : > { %1306 = vmatprep.mubr.msk.bf16.mxu0 %vm425_vm0, %v394_v7  ;;  %v387_v16 = vld [vmem:[%s1528_s27 + $0x48] sm:$0xff]  ;;  %v397_v17 = vpack.c.bf16 %v385_v14, %v384_v13  ;;  %v388_v19 = vld [vmem:[%s1528_s27 + $0x50] sm:$0xff]  ;;  %v389_v20 = vld [vmem:[%s1528_s27 + $0x58] sm:$0xff] }
  0x14   : > { %1307 = vmatmul.mubr.msk.bf16.vlgmr.msra.gmra.mrb[0].mxu0 %vm425_vm0, %v395_v11  ;;  %v398_v18 = vpack.c.bf16 %v387_v16, %v386_v15  ;;  %v390_v21 = vld [vmem:[%s1528_s27 + $0x60] sm:$0xff]  ;;  %v391_v22 = vld [vmem:[%s1528_s27 + $0x68] sm:$0xff]  ;;  %v399_v23 = vpack.c.bf16 %v389_v20, %v388_v19  ;;  %v392_v25 = vld [vmem:[%s1528_s27 + $0x70] sm:$0xff]  ;;  %1329 = vmatpush3.bf16.msra.mxu1 %v1401_v29 }
  0x15   : > { %1310 = vmatprep.mubr.msk.bf16.mxu0 %vm425_vm0, %v396_v12  ;;  %v400_v24 = vpack.c.bf16 %v391_v22, %v390_v21  ;;  %v393_v26 = vld [vmem:[%s1528_s27 + $0x78] sm:$0xff]  ;;  %1347 = vmatpush3.bf16.msra.mxu0 %v1402_v30 }
  0x16   : > { %v401_v27 = vpack.c.bf16 %v393_v26, %v392_v25  ;;  %v1404_v25 = vld [vmem:[%s1715_s7 + $0x8] sm:$0xff]   ;;  %v1405_v26 = vld [vmem:[%s1715_s7 + $0x10] sm:$0xff]  }
  0x1c   : > { %1311 = vmatmul.mubr.msk.bf16.gmra.mrb[4].mxu0 %vm425_vm0, %v397_v17 }
  0x1d   : > { %1314 = vmatprep.mubr.msk.bf16.mxu0 %vm425_vm0, %v398_v18 }
  0x24   : > { %1315 = vmatmul.mubr.msk.bf16.gmra.mrb[8].mxu0 %vm425_vm0, %v399_v23 }
  0x25   : > { %1318 = vmatprep.mubr.msk.bf16.mxu0 %vm425_vm0, %v400_v24  ;;  %v1403_v24 = vld [vmem:[%s1715_s7] sm:$0xff]  }
  0x26   : > { %1364 = vmatprep.subr.bf16.mxu1 %v1403_v24 }
  0x2c   : > { %1319 = vmatmul.mubr.msk.bf16.gmra.mrb[12].mxu0 %vm425_vm0, %v401_v27  ;;  %v1221_v27 = vld [vmem:[%s1712_s4] ss:$0 sm:$0xff] }
  0xe7   : > { %v1308_v32 = vpop.f32.mrb[0].mxu0 }
  0xe8   : > { %v493_v33 = vadd.f32 %v1308_v32, %v1210_v31  ;;  %v484_v34 = vpop.f32.mrb[1].mxu0 }
  0xe9   : > { %v485_v35 = vadd.f32 %v1210_v31, %v484_v34  ;;  %v1309_v36 = vpop.f32.mrb[2].mxu0 }
  0xea   : > { %v496_v37 = vadd.f32 %v1309_v36, %v1210_v31  ;;  %v487_v38 = vpop.f32.mrb[3].mxu0  ;;  %v549_v40 = vmax.f32 %v493_v33, 0.0 }
  0xeb   : > { %v488_v39 = vadd.f32 %v1210_v31, %v487_v38  ;;  %v547_v42 = vmax.f32 %v485_v35, 0.0 }
  0xec   : > { %v550_v41 = vmax.f32 %v496_v37, 0.0 }
  0xed   : > { %v548_v43 = vmax.f32 %v488_v39, 0.0 }
  0xee   : > { %v564_v44 = vpack.c.bf16 %v550_v41, %v549_v40 }
  0xef   : > { %v1312_v45 = vpop.f32.mrb[4].mxu0  ;;  %v563_v46 = vpack.c.bf16 %v548_v43, %v547_v42 }
  0xf0   : > { %v509_v47 = vadd.f32 %v1312_v45, %v1210_v31  ;;  %v500_v48 = vpop.f32.mrb[5].mxu0 }
  0xf1   : > { %v501_v49 = vadd.f32 %v1210_v31, %v500_v48  ;;  %v1313_v50 = vpop.f32.mrb[6].mxu0  ;;  %1330 = vmatprep.mubr.msk.bf16.mxu1 %vm610_vm1, %v563_v46 }
  0xf2   : > { %v512_v51 = vadd.f32 %v1313_v50, %v1210_v31  ;;  %v503_v52 = vpop.f32.mrb[7].mxu0  ;;  %1331 = vmatmul.mubr.msk.bf16.vlgmr.msra.gmra.mrb[0].mxu1 %vm610_vm1, %v564_v44  ;;  %v553_v54 = vmax.f32 %v509_v47, 0.0 }
  0xf3   : > { %v504_v53 = vadd.f32 %v1210_v31, %v503_v52  ;;  %v551_v56 = vmax.f32 %v501_v49, 0.0  ;;  %1365 = vmatpush3.bf16.msra.mxu1 %v1403_v24 }
  0xf4   : > { %v554_v55 = vmax.f32 %v512_v51, 0.0  ;;  %1366 = vmatprep.subr.bf16.mxu1 %v1404_v25 }
  0xf5   : > { %v552_v57 = vmax.f32 %v504_v53, 0.0 }
  0xf6   : > { %v566_v58 = vpack.c.bf16 %v554_v55, %v553_v54 }
  0xf7   : > { %v565_v59 = vpack.c.bf16 %v552_v57, %v551_v56  ;;  %v1316_v60 = vpop.f32.mrb[8].mxu0  ;;  %1367 = vmatpush3.bf16.msra.mxu1 %v1404_v25 }
  0xf8   : > { %v525_v61 = vadd.f32 %v1316_v60, %v1210_v31  ;;  %v516_v62 = vpop.f32.mrb[9].mxu0  ;;  %1368 = vmatprep.subr.bf16.mxu1 %v1405_v26 }
  0xf9   : > { %v517_v63 = vadd.f32 %v1210_v31, %v516_v62  ;;  %v1317_v0 = vpop.f32.mrb[10].mxu0  ;;  %1334 = vmatprep.mubr.msk.bf16.mxu1 %vm610_vm1, %v565_v59 }
  0xfa   : > { %v528_v1 = vadd.f32 %v1317_v0, %v1210_v31  ;;  %v519_v2 = vpop.f32.mrb[11].mxu0  ;;  %1335 = vmatmul.mubr.msk.bf16.gmra.mrb[4].mxu1 %vm610_vm1, %v566_v58  ;;  %v557_v4 = vmax.f32 %v525_v61, 0.0 }
  0xfb   : > { %v520_v3 = vadd.f32 %v1210_v31, %v519_v2  ;;  %v555_v6 = vmax.f32 %v517_v63, 0.0  ;;  %1369 = vmatpush3.bf16.msra.mxu1 %v1405_v26 }
  0xfc   : > { %v558_v5 = vmax.f32 %v528_v1, 0.0 }
  0xfd   : > { %v556_v7 = vmax.f32 %v520_v3, 0.0 }
  0xfe   : > { %v568_v8 = vpack.c.bf16 %v558_v5, %v557_v4  ;;  %v1406_v4 = vld [vmem:[%s1715_s7 + $0x18] sm:$0xff]   ;;  %v1234_v5 = vld [vmem:[%s1714_s6] ss:$0 sm:$0xff] }
  0xff   : > { %v567_v9 = vpack.c.bf16 %v556_v7, %v555_v6  ;;  %v1320_v10 = vpop.f32.mrb[12].mxu0  ;;  %1370 = vmatprep.subr.bf16.mxu1 %v1406_v4 }
 0x100   : > { %v541_v11 = vadd.f32 %v1320_v10, %v1210_v31  ;;  %v532_v12 = vpop.f32.mrb[13].mxu0  ;;  %1371 = vmatpush3.bf16.msra.mxu1 %v1406_v4 }
 0x101   : > { %v533_v13 = vadd.f32 %v1210_v31, %v532_v12  ;;  %v1321_v14 = vpop.f32.mrb[14].mxu0  ;;  %1338 = vmatprep.mubr.msk.bf16.mxu1 %vm610_vm1, %v567_v9 }
 0x102   : > { %v544_v15 = vadd.f32 %v1321_v14, %v1210_v31  ;;  %v535_v16 = vpop.f32.mrb[15].mxu0  ;;  %1339 = vmatmul.mubr.msk.bf16.gmra.mrb[8].mxu1 %vm610_vm1, %v568_v8  ;;  %v561_v18 = vmax.f32 %v541_v11, 0.0 }
 0x103   : > { %v536_v17 = vadd.f32 %v1210_v31, %v535_v16  ;;  %v559_v20 = vmax.f32 %v533_v13, 0.0 }
 0x104   : > { %v562_v19 = vmax.f32 %v544_v15, 0.0 }
 0x105   : > { %v560_v21 = vmax.f32 %v536_v17, 0.0 }
 0x106   : > { %v570_v22 = vpack.c.bf16 %v562_v19, %v561_v18 }
 0x107   : > { %v569_v23 = vpack.c.bf16 %v560_v21, %v559_v20 }
 0x109   : > { %1342 = vmatprep.mubr.msk.bf16.mxu1 %vm610_vm1, %v569_v23 }
 0x10a   : > { %1343 = vmatmul.mubr.msk.bf16.gmra.mrb[12].mxu1 %vm610_vm1, %v570_v22 }
 0x1c5   : > { %v1332_v28 = vpop.f32.mrb[0].mxu1 }
 0x1c6   : > { %v678_v29 = vadd.f32 %v1332_v28, %v1221_v27  ;;  %v669_v30 = vpop.f32.mrb[1].mxu1 }
 0x1c7   : > { %v670_v31 = vadd.f32 %v1221_v27, %v669_v30  ;;  %v1333_v32 = vpop.f32.mrb[2].mxu1 }
 0x1c8   : > { %1079 = vst.msk [vmem:[%s1590_s28 + $0x10] sm:$0xff] %vm755_vm2, %v678_v29  ;;  %v681_v33 = vadd.f32 %v1333_v32, %v1221_v27  ;;  %v672_v34 = vpop.f32.mrb[3].mxu1 }
 0x1c9   : > { %1077 = vst.msk [vmem:[%s1590_s28] sm:$0xff] %vm755_vm2, %v670_v31  ;;  %v673_v35 = vadd.f32 %v1221_v27, %v672_v34 }
 0x1ca   : > { %v733_v36 = vpack.c.bf16 %v681_v33, %v678_v29  ;;  %1080 = vst.msk [vmem:[%s1590_s28 + $0x18] sm:$0xff] %vm755_vm2, %v681_v33 }
 0x1cb   : > { %v732_v37 = vpack.c.bf16 %v673_v35, %v670_v31  ;;  %1078 = vst.msk [vmem:[%s1590_s28 + $0x8] sm:$0xff] %vm755_vm2, %v673_v35 }
 0x1cd   : > { %v1336_v38 = vpop.f32.mrb[4].mxu1  ;;  %1348 = vmatprep.mubr.msk.bf16.mxu0 %vm755_vm2, %v732_v37 }
 0x1ce   : > { %v694_v39 = vadd.f32 %v1336_v38, %v1221_v27  ;;  %v685_v40 = vpop.f32.mrb[5].mxu1  ;;  %1349 = vmatmul.mubr.msk.bf16.vlgmr.msra.gmra.mrb[16].mxu0 %vm755_vm2, %v733_v36 }
 0x1cf   : > { %v686_v41 = vadd.f32 %v1221_v27, %v685_v40  ;;  %v1337_v42 = vpop.f32.mrb[6].mxu1 }
 0x1d0   : > { %1083 = vst.msk [vmem:[%s1590_s28 + $0x30] sm:$0xff] %vm755_vm2, %v694_v39  ;;  %v697_v43 = vadd.f32 %v1337_v42, %v1221_v27  ;;  %v688_v44 = vpop.f32.mrb[7].mxu1 }
 0x1d1   : > { %1081 = vst.msk [vmem:[%s1590_s28 + $0x20] sm:$0xff] %vm755_vm2, %v686_v41  ;;  %v689_v45 = vadd.f32 %v1221_v27, %v688_v44 }
 0x1d2   : > { %v735_v46 = vpack.c.bf16 %v697_v43, %v694_v39  ;;  %1084 = vst.msk [vmem:[%s1590_s28 + $0x38] sm:$0xff] %vm755_vm2, %v697_v43 }
 0x1d3   : > { %v734_v47 = vpack.c.bf16 %v689_v45, %v686_v41  ;;  %1082 = vst.msk [vmem:[%s1590_s28 + $0x28] sm:$0xff] %vm755_vm2, %v689_v45 }
 0x1d5   : > { %v1340_v48 = vpop.f32.mrb[8].mxu1  ;;  %1352 = vmatprep.mubr.msk.bf16.mxu0 %vm755_vm2, %v734_v47 }
 0x1d6   : > { %v710_v49 = vadd.f32 %v1340_v48, %v1221_v27  ;;  %v701_v50 = vpop.f32.mrb[9].mxu1  ;;  %1353 = vmatmul.mubr.msk.bf16.gmra.mrb[20].mxu0 %vm755_vm2, %v735_v46 }
 0x1d7   : > { %v702_v51 = vadd.f32 %v1221_v27, %v701_v50  ;;  %v1341_v52 = vpop.f32.mrb[10].mxu1 }
 0x1d8   : > { %1087 = vst.msk [vmem:[%s1590_s28 + $0x50] sm:$0xff] %vm755_vm2, %v710_v49  ;;  %v713_v53 = vadd.f32 %v1341_v52, %v1221_v27  ;;  %v704_v54 = vpop.f32.mrb[11].mxu1 }
 0x1d9   : > { %1085 = vst.msk [vmem:[%s1590_s28 + $0x40] sm:$0xff] %vm755_vm2, %v702_v51  ;;  %v705_v55 = vadd.f32 %v1221_v27, %v704_v54 }
 0x1da   : > { %v737_v56 = vpack.c.bf16 %v713_v53, %v710_v49  ;;  %1088 = vst.msk [vmem:[%s1590_s28 + $0x58] sm:$0xff] %vm755_vm2, %v713_v53 }
 0x1db   : > { %v736_v57 = vpack.c.bf16 %v705_v55, %v702_v51  ;;  %1086 = vst.msk [vmem:[%s1590_s28 + $0x48] sm:$0xff] %vm755_vm2, %v705_v55 }
 0x1dd   : > { %v1344_v58 = vpop.f32.mrb[12].mxu1  ;;  %1356 = vmatprep.mubr.msk.bf16.mxu0 %vm755_vm2, %v736_v57 }
 0x1de   : > { %v726_v59 = vadd.f32 %v1344_v58, %v1221_v27  ;;  %v717_v60 = vpop.f32.mrb[13].mxu1  ;;  %1357 = vmatmul.mubr.msk.bf16.gmra.mrb[24].mxu0 %vm755_vm2, %v737_v56 }
 0x1df   : > { %v718_v61 = vadd.f32 %v1221_v27, %v717_v60  ;;  %v1345_v62 = vpop.f32.mrb[14].mxu1 }
 0x1e0   : > { %1091 = vst.msk [vmem:[%s1590_s28 + $0x70] sm:$0xff] %vm755_vm2, %v726_v59  ;;  %v729_v63 = vadd.f32 %v1345_v62, %v1221_v27  ;;  %v720_v0 = vpop.f32.mrb[15].mxu1  ;;  %v1649_v62 = vld [vmem:[%s1716_s8] ss:$0 sm:$0xff] }
 0x1e1   : > { %1089 = vst.msk [vmem:[%s1590_s28 + $0x60] sm:$0xff] %vm755_vm2, %v718_v61  ;;  %v721_v1 = vadd.f32 %v1221_v27, %v720_v0 }
 0x1e2   : > { %v739_v2 = vpack.c.bf16 %v729_v63, %v726_v59  ;;  %1092 = vst.msk [vmem:[%s1590_s28 + $0x78] sm:$0xff] %vm755_vm2, %v729_v63 }
 0x1e3   : > { %v738_v3 = vpack.c.bf16 %v721_v1, %v718_v61  ;;  %1090 = vst.msk [vmem:[%s1590_s28 + $0x68] sm:$0xff] %vm755_vm2, %v721_v1 }
 0x1e5   : > { %1360 = vmatprep.mubr.msk.bf16.mxu0 %vm755_vm2, %v738_v3 }
 0x1e6   : > { %1361 = vmatmul.mubr.msk.bf16.gmra.mrb[28].mxu0 %vm755_vm2, %v739_v2 }
 0x2a1   : > { %v1350_v6 = vpop.f32.mrb[16].mxu0 }
 0x2a2   : > { %v823_v7 = vadd.f32 %v1350_v6, %v1234_v5  ;;  %v814_v8 = vpop.f32.mrb[17].mxu0 }
 0x2a3   : > { %v815_v9 = vadd.f32 %v1234_v5, %v814_v8  ;;  %v1351_v10 = vpop.f32.mrb[18].mxu0 }
 0x2a4   : > { %v826_v11 = vadd.f32 %v1351_v10, %v1234_v5  ;;  %v817_v12 = vpop.f32.mrb[19].mxu0  ;;  %v879_v14 = vmax.f32 %v823_v7, 0.0 }
 0x2a5   : > { %v818_v13 = vadd.f32 %v1234_v5, %v817_v12  ;;  %v877_v16 = vmax.f32 %v815_v9, 0.0 }
 0x2a6   : > { %v880_v15 = vmax.f32 %v826_v11, 0.0 }
 0x2a7   : > { %v878_v17 = vmax.f32 %v818_v13, 0.0 }
 0x2a8   : > { %v894_v18 = vpack.c.bf16 %v880_v15, %v879_v14 }
 0x2a9   : > { %v893_v19 = vpack.c.bf16 %v878_v17, %v877_v16  ;;  %v1354_v20 = vpop.f32.mrb[20].mxu0 }
 0x2aa   : > { %v839_v21 = vadd.f32 %v1354_v20, %v1234_v5  ;;  %v830_v22 = vpop.f32.mrb[21].mxu0 }
 0x2ab   : > { %v831_v23 = vadd.f32 %v1234_v5, %v830_v22  ;;  %v1355_v24 = vpop.f32.mrb[22].mxu0  ;;  %1372 = vmatprep.mubr.msk.bf16.mxu1 %vm610_vm1, %v893_v19 }
 0x2ac   : > { %v842_v25 = vadd.f32 %v1355_v24, %v1234_v5  ;;  %v833_v26 = vpop.f32.mrb[23].mxu0  ;;  %1373 = vmatmul.mubr.msk.bf16.vlgmr.msra.gmra.mrb[16].mxu1 %vm610_vm1, %v894_v18  ;;  %v883_v28 = vmax.f32 %v839_v21, 0.0 }
 0x2ad   : > { %v834_v27 = vadd.f32 %v1234_v5, %v833_v26  ;;  %v881_v30 = vmax.f32 %v831_v23, 0.0 }
 0x2ae   : > { %v884_v29 = vmax.f32 %v842_v25, 0.0 }
 0x2af   : > { %v882_v31 = vmax.f32 %v834_v27, 0.0 }
 0x2b0   : > { %v896_v32 = vpack.c.bf16 %v884_v29, %v883_v28 }
 0x2b1   : > { %v895_v33 = vpack.c.bf16 %v882_v31, %v881_v30  ;;  %v1358_v34 = vpop.f32.mrb[24].mxu0 }
 0x2b2   : > { %v855_v35 = vadd.f32 %v1358_v34, %v1234_v5  ;;  %v846_v36 = vpop.f32.mrb[25].mxu0 }
 0x2b3   : > { %v847_v37 = vadd.f32 %v1234_v5, %v846_v36  ;;  %v1359_v38 = vpop.f32.mrb[26].mxu0  ;;  %1376 = vmatprep.mubr.msk.bf16.mxu1 %vm610_vm1, %v895_v33 }
 0x2b4   : > { %v858_v39 = vadd.f32 %v1359_v38, %v1234_v5  ;;  %v849_v40 = vpop.f32.mrb[27].mxu0  ;;  %1377 = vmatmul.mubr.msk.bf16.gmra.mrb[20].mxu1 %vm610_vm1, %v896_v32  ;;  %v887_v42 = vmax.f32 %v855_v35, 0.0 }
 0x2b5   : > { %v850_v41 = vadd.f32 %v1234_v5, %v849_v40  ;;  %v885_v44 = vmax.f32 %v847_v37, 0.0 }
 0x2b6   : > { %v888_v43 = vmax.f32 %v858_v39, 0.0 }
 0x2b7   : > { %v886_v45 = vmax.f32 %v850_v41, 0.0 }
 0x2b8   : > { %v898_v46 = vpack.c.bf16 %v888_v43, %v887_v42 }
 0x2b9   : > { %v897_v47 = vpack.c.bf16 %v886_v45, %v885_v44  ;;  %v1362_v48 = vpop.f32.mrb[28].mxu0 }
 0x2ba   : > { %v871_v49 = vadd.f32 %v1362_v48, %v1234_v5  ;;  %v862_v50 = vpop.f32.mrb[29].mxu0 }
 0x2bb   : > { %v863_v51 = vadd.f32 %v1234_v5, %v862_v50  ;;  %v1363_v52 = vpop.f32.mrb[30].mxu0  ;;  %1380 = vmatprep.mubr.msk.bf16.mxu1 %vm610_vm1, %v897_v47 }
 0x2bc   : > { %v874_v53 = vadd.f32 %v1363_v52, %v1234_v5  ;;  %v865_v54 = vpop.f32.mrb[31].mxu0  ;;  %1381 = vmatmul.mubr.msk.bf16.gmra.mrb[24].mxu1 %vm610_vm1, %v898_v46  ;;  %v891_v56 = vmax.f32 %v871_v49, 0.0 }
 0x2bd   : > { %v866_v55 = vadd.f32 %v1234_v5, %v865_v54  ;;  %v889_v58 = vmax.f32 %v863_v51, 0.0 }
 0x2be   : > { %v892_v57 = vmax.f32 %v874_v53, 0.0 }
 0x2bf   : > { %v890_v59 = vmax.f32 %v866_v55, 0.0 }
 0x2c0   : > { %v900_v60 = vpack.c.bf16 %v892_v57, %v891_v56 }
 0x2c1   : > { %v899_v61 = vpack.c.bf16 %v890_v59, %v889_v58 }
 0x2c3   : > { %1384 = vmatprep.mubr.msk.bf16.mxu1 %vm610_vm1, %v899_v61 }
 0x2c4   : > { %1385 = vmatmul.mubr.msk.bf16.gmra.mrb[28].mxu1 %vm610_vm1, %v900_v60 }
 0x37f   : > { %v1374_v63 = vpop.f32.mrb[16].mxu1 }
 0x380   : > { %v1007_v0 = vadd.f32 %v1374_v63, %v1649_v62  ;;  %v998_v1 = vpop.f32.mrb[17].mxu1 }
 0x381   : > { %v999_v2 = vadd.f32 %v1649_v62, %v998_v1  ;;  %v1375_v3 = vpop.f32.mrb[18].mxu1 }
 0x382   : > { %1407 = vtanh.f32 %v1007_v0  ;;  %v1010_v4 = vadd.f32 %v1375_v3, %v1649_v62  ;;  %v1001_v5 = vpop.f32.mrb[19].mxu1 }
 0x383   : > { %1409 = vtanh.f32 %v999_v2  ;;  %v1002_v6 = vadd.f32 %v1649_v62, %v1001_v5 }
 0x384   : > { %1411 = vtanh.f32 %v1010_v4 }
 0x385   : > { %1413 = vtanh.f32 %v1002_v6 }
 0x387   : > { %v1378_v7 = vpop.f32.mrb[20].mxu1 }
 0x388   : > { %v1023_v8 = vadd.f32 %v1378_v7, %v1649_v62  ;;  %v1014_v9 = vpop.f32.mrb[21].mxu1 }
 0x389   : > { %v1015_v10 = vadd.f32 %v1649_v62, %v1014_v9  ;;  %v1379_v11 = vpop.f32.mrb[22].mxu1 }
 0x38a   : > { %1415 = vtanh.f32 %v1023_v8  ;;  %v1026_v12 = vadd.f32 %v1379_v11, %v1649_v62  ;;  %v1017_v13 = vpop.f32.mrb[23].mxu1 }
 0x38b   : > { %1417 = vtanh.f32 %v1015_v10  ;;  %v1018_v14 = vadd.f32 %v1649_v62, %v1017_v13 }
 0x38c   : > { %v1408_v15 = vpop.eup %1407  ;;  %1419 = vtanh.f32 %v1026_v12 }
 0x38d   : > { %v1410_v16 = vpop.eup %1409  ;;  %1095 = vst.msk [vmem:[%s1661_s18 + $0x10] sm:$0xff] %vm425_vm0, %v1408_v15  ;;  %1421 = vtanh.f32 %v1018_v14 }
 0x38e   : > { %v1412_v17 = vpop.eup %1411  ;;  %1093 = vst.msk [vmem:[%s1661_s18] sm:$0xff] %vm425_vm0, %v1410_v16 }
 0x38f   : > { %v1414_v18 = vpop.eup %1413  ;;  %1096 = vst.msk [vmem:[%s1661_s18 + $0x18] sm:$0xff] %vm425_vm0, %v1412_v17  ;;  %v1382_v19 = vpop.f32.mrb[24].mxu1 }
 0x390   : > { %1094 = vst.msk [vmem:[%s1661_s18 + $0x8] sm:$0xff] %vm425_vm0, %v1414_v18  ;;  %v1039_v20 = vadd.f32 %v1382_v19, %v1649_v62  ;;  %v1030_v21 = vpop.f32.mrb[25].mxu1 }
 0x391   : > { %v1031_v22 = vadd.f32 %v1649_v62, %v1030_v21  ;;  %v1383_v23 = vpop.f32.mrb[26].mxu1 }
 0x392   : > { %1423 = vtanh.f32 %v1039_v20  ;;  %v1042_v24 = vadd.f32 %v1383_v23, %v1649_v62  ;;  %v1033_v25 = vpop.f32.mrb[27].mxu1 }
 0x393   : > { %1425 = vtanh.f32 %v1031_v22  ;;  %v1034_v26 = vadd.f32 %v1649_v62, %v1033_v25 }
 0x394   : > { %v1416_v27 = vpop.eup %1415  ;;  %1427 = vtanh.f32 %v1042_v24 }
 0x395   : > { %v1418_v28 = vpop.eup %1417  ;;  %1099 = vst.msk [vmem:[%s1661_s18 + $0x30] sm:$0xff] %vm425_vm0, %v1416_v27  ;;  %1429 = vtanh.f32 %v1034_v26 }
 0x396   : > { %v1420_v29 = vpop.eup %1419  ;;  %1097 = vst.msk [vmem:[%s1661_s18 + $0x20] sm:$0xff] %vm425_vm0, %v1418_v28 }
 0x397   : > { %v1422_v30 = vpop.eup %1421  ;;  %1100 = vst.msk [vmem:[%s1661_s18 + $0x38] sm:$0xff] %vm425_vm0, %v1420_v29  ;;  %v1386_v31 = vpop.f32.mrb[28].mxu1 }
 0x398   : > { %1098 = vst.msk [vmem:[%s1661_s18 + $0x28] sm:$0xff] %vm425_vm0, %v1422_v30  ;;  %v1055_v32 = vadd.f32 %v1386_v31, %v1649_v62  ;;  %v1046_v33 = vpop.f32.mrb[29].mxu1 }
 0x399   : > { %v1047_v34 = vadd.f32 %v1649_v62, %v1046_v33  ;;  %v1387_v35 = vpop.f32.mrb[30].mxu1 }
 0x39a   : > { %1431 = vtanh.f32 %v1055_v32  ;;  %v1058_v36 = vadd.f32 %v1387_v35, %v1649_v62  ;;  %v1049_v37 = vpop.f32.mrb[31].mxu1 }
 0x39b   : > { %1433 = vtanh.f32 %v1047_v34  ;;  %v1050_v38 = vadd.f32 %v1649_v62, %v1049_v37 }
 0x39c   : > { %v1424_v39 = vpop.eup %1423  ;;  %1435 = vtanh.f32 %v1058_v36 }
 0x39d   : > { %v1426_v40 = vpop.eup %1425  ;;  %1103 = vst.msk [vmem:[%s1661_s18 + $0x50] sm:$0xff] %vm425_vm0, %v1424_v39  ;;  %1437 = vtanh.f32 %v1050_v38 }
 0x39e   : > { %v1428_v41 = vpop.eup %1427  ;;  %1101 = vst.msk [vmem:[%s1661_s18 + $0x40] sm:$0xff] %vm425_vm0, %v1426_v40 }
 0x39f   : > { %v1430_v42 = vpop.eup %1429  ;;  %1104 = vst.msk [vmem:[%s1661_s18 + $0x58] sm:$0xff] %vm425_vm0, %v1428_v41 }
 0x3a0   : > { %1102 = vst.msk [vmem:[%s1661_s18 + $0x48] sm:$0xff] %vm425_vm0, %v1430_v42 }
 0x3a4   : > { %v1432_v43 = vpop.eup %1431 }
 0x3a5   : > { %v1434_v44 = vpop.eup %1433  ;;  %1107 = vst.msk [vmem:[%s1661_s18 + $0x70] sm:$0xff] %vm425_vm0, %v1432_v43 }
 0x3a6   : > { %v1436_v45 = vpop.eup %1435  ;;  %1105 = vst.msk [vmem:[%s1661_s18 + $0x60] sm:$0xff] %vm425_vm0, %v1434_v44 }
 0x3a7   : > { %v1438_v46 = vpop.eup %1437  ;;  %1108 = vst.msk [vmem:[%s1661_s18 + $0x78] sm:$0xff] %vm425_vm0, %v1436_v45 }
 0x3a8   : > { %1106 = vst.msk [vmem:[%s1661_s18 + $0x68] sm:$0xff] %vm425_vm0, %v1438_v46 }
 0x3a9 PF: > { %s21_s13 = sadd.s32 1, %s1445_s13  }
 0x3aa   : > { %p18_p4 = scmp.ge.s32.totalorder %s21_s13, 4  }
 0x3ac   :  { %20 = sbr.rel (!%p18_p4) target bundleno = 1 (0x1), region = 98 }

</bundles_post_ra>
